<compile_context>
chip_gen: v7x
topology: tpu7x:2x2x1
jax: 0.10.0
libtpu: 0.0.40
codegen_flags: <defaults>
</compile_context>

<pallas_src>
import jax
import jax.numpy as jnp
from jax import lax
from jax.experimental import pallas as pl
from jax.experimental.pallas import tpu as pltpu


def _cdiv(a, b):
    return -(-a // b)


def _round_up(x, m):
    return _cdiv(x, m) * m


def _num_tensorcores():
    """2 TensorCores only on v7x; v5e / v6e are single-TC chips."""
    try:
        kind = (getattr(jax.devices()[0], "device_kind", "") or "").lower()
        if "v7" in kind:
            return 2
    except Exception:
        pass
    return 1


def m4c_decoding_bce_with_mask_loss(scores, targets, loss_mask, *,
                                    target_block_bytes=4 * 1024 * 1024,
                                    num_cores=None,
                                    vmem_limit_bytes=48 * 1024 * 1024):
    """scores, targets: (B, T, V); loss_mask: (B, T) -> scalar f32 loss."""
    assert scores.ndim == 3 and loss_mask.ndim == 2
    B, T, V = scores.shape
    assert targets.shape == scores.shape and loss_mask.shape == (B, T)
    R = B * T

    if num_cores is None:
        num_cores = _num_tensorcores()
    num_cores = max(1, min(num_cores, _cdiv(R, 8)))

    # ---- flatten; NO padding / HBM round-trips of the big operands ----------
    scores2d = scores.reshape(R, V)
    # Targets are (multi-)hot 0/1 -> bf16 is exact and halves their HBM bytes.
    targets2d = targets.reshape(R, V).astype(jnp.bfloat16)
    mask2d = loss_mask.reshape(R, 1).astype(jnp.float32)

    # ---- tile selection: ~target_block_bytes for the scores block -----------
    s_item = jnp.dtype(scores2d.dtype).itemsize
    t_item = jnp.dtype(targets2d.dtype).itemsize
    # Sublane alignment follows the narrowest streamed dtype's packing.
    row_align = 8 * (4 // max(min(s_item, t_item), 1))
    rows_budget = max(row_align,
                      (target_block_bytes // max(V * s_item, 1))
                      // row_align * row_align)
    rows = min(rows_budget, _round_up(_cdiv(R, num_cores), row_align))
    total_blocks = _cdiv(R, rows)            # blocks holding >= 1 valid row
    steps = _cdiv(total_blocks, num_cores)
    last_block = total_blocks - 1

    def row_map(c, i):
        # At most num_cores-1 trailing blocks are fully out of range; clamp
        # them onto the last valid block (their rows are zeroed in-kernel).
        return (jnp.minimum(c * steps + i, last_block), 0)

    def kernel(scores_ref, targets_ref, mask_ref, partial_ref):
        c = pl.program_id(0)
        i = pl.program_id(1)

        @pl.when(i == 0)
        def _init():
            partial_ref[...] = jnp.zeros_like(partial_ref)

        x = scores_ref[...].astype(jnp.float32)        # (rows, V)
        y = targets_ref[...].astype(jnp.float32)       # (rows, V)
        msk = mask_ref[...].astype(jnp.float32)        # (rows, 1)

        # Ragged-tail handling: logical rows >= R contribute nothing.  Selects
        # (not arithmetic) so garbage/NaN in padded reads cannot propagate.
        row0 = (c * steps + i) * rows
        local = lax.broadcasted_iota(jnp.int32, (rows, 1), 0)
        valid = (row0 + local) < R                     # (rows, 1) bool
        x = jnp.where(valid, x, 0.0)
        y = jnp.where(valid, y, 0.0)
        m = jnp.where(valid, msk, 0.0)

        # Numerically stable BCE-with-logits: max(x,0) - x*y + log1p(exp(-|x|))
        losses = (jnp.maximum(x, 0.0) - x * y
                  + jnp.log1p(jnp.exp(-jnp.abs(x)))) * m

        # Sublane-only partial reduce into the per-core lane-dense accumulator;
        # the tiny cross-lane reduce and the divide run in XLA outside.
        partial_ref[...] += jnp.sum(losses, axis=0, keepdims=True)

    cost = pl.CostEstimate(
        flops=int(6 * R * V),
        transcendentals=int(2 * R * V),
        bytes_accessed=int(R * V * (s_item + t_item) + R * 4 + num_cores * V * 4),
    )

    partials = pl.pallas_call(
        kernel,
        out_shape=jax.ShapeDtypeStruct((num_cores, 1, V), jnp.float32),
        grid_spec=pltpu.PrefetchScalarGridSpec(
            num_scalar_prefetch=0,
            grid=(num_cores, steps),
            in_specs=[
                pl.BlockSpec((rows, V), row_map),
                pl.BlockSpec((rows, V), row_map),
                # Per-step (rows, 1) mask block: a few KiB, fully pipelined.
                pl.BlockSpec((rows, 1), row_map),
            ],
            out_specs=pl.BlockSpec((None, 1, V), lambda c, i: (c, 0, 0)),
        ),
        compiler_params=pltpu.CompilerParams(
            dimension_semantics=("parallel", "arbitrary"),
            vmem_limit_bytes=vmem_limit_bytes),
        cost_estimate=cost,
    )(scores2d, targets2d, mask2d)

    total = jnp.sum(partials)
    count = jnp.maximum(jnp.sum(loss_mask.astype(jnp.float32)), 1.0)
    return total / count


def _reference_loss(scores, targets, loss_mask):
    x = scores.astype(jnp.float32)
    y = targets.astype(jnp.float32)
    m = loss_mask.astype(jnp.float32)
    losses = jnp.maximum(x, 0.0) - x * y + jnp.log1p(jnp.exp(-jnp.abs(x)))
    losses = losses * m[..., None]
    count = jnp.maximum(jnp.sum(m), 1.0)
    return jnp.sum(losses) / count


if __name__ == "__main__":
    key = jax.random.PRNGKey(0)
    k1, k2, k3 = jax.random.split(key, 3)

    B, T, V = 2, 8, 32  # batch, decode steps, answer-vocab size
    scores = jax.random.normal(k1, (B, T, V), dtype=jnp.float32) * 2.0
    targets = (jax.random.uniform(k2, (B, T, V)) > 0.7).astype(jnp.float32)
    loss_mask = (jax.random.uniform(k3, (B, T)) > 0.3).astype(jnp.float32)

    loss = m4c_decoding_bce_with_mask_loss(scores, targets, loss_mask)
    loss = jax.block_until_ready(loss)

    ref = _reference_loss(scores, targets, loss_mask)
    assert jnp.allclose(loss, ref, rtol=1e-5, atol=1e-5), (loss, ref)

    print("KERNEL_OK")
</pallas_src>

<mosaic_0001>
module attributes {stable_mosaic.version = 11 : i64} {
  func.func @kernel(%arg0: i32, %arg1: i32, %arg2: memref<16x32xf32, #tpu.memory_space<vmem>>, %arg3: memref<16x32xbf16, #tpu.memory_space<vmem>>, %arg4: memref<16x1xf32, #tpu.memory_space<vmem>>, %arg5: memref<1x1x32xf32, #tpu.memory_space<vmem>>) attributes {dimension_semantics = [#tpu.dimension_semantics<parallel>, #tpu.dimension_semantics<arbitrary>], iteration_bounds = array<i64: 1, 1>, scalar_prefetch = 0 : i64, scratch_operands = 0 : i64, tpu.core_type = #tpu.core_type<tc>, window_params = [{transform_indices = @transform_0, window_bounds = array<i64: 16, 32>}, {transform_indices = @transform_1, window_bounds = array<i64: 16, 32>}, {transform_indices = @transform_2, window_bounds = array<i64: 16, 1>}, {transform_indices = @transform_3, window_bounds = array<i64: 1, 1, 32>}]} {
    %c0_i32 = arith.constant 0 : i32
    %0 = arith.cmpi eq, %arg1, %c0_i32 : i32
    %1 = arith.extui %0 : i1 to i32
    %c0_i32_0 = arith.constant 0 : i32
    %2 = arith.cmpi ne, %1, %c0_i32_0 : i32
    scf.if %2 {
      %cst_18 = arith.constant 0.000000e+00 : f32
      %45 = vector.broadcast %cst_18 : f32 to vector<1x32xf32>
      %c0_19 = arith.constant 0 : index
      %c0_20 = arith.constant 0 : index
      %c0_21 = arith.constant 0 : index
      %46 = vector.load %arg5[%c0_19, %c0_20, %c0_21] : memref<1x1x32xf32, #tpu.memory_space<vmem>>, vector<1x1x32xf32>
      %47 = vector.shape_cast %46 : vector<1x1x32xf32> to vector<1x32xf32>
      %48 = vector.shape_cast %45 : vector<1x32xf32> to vector<1x1x32xf32>
      tpu.vector_store %arg5[%c0_19, %c0_20, %c0_21], %48 {strides = array<i32>} : memref<1x1x32xf32, #tpu.memory_space<vmem>>, vector<1x1x32xf32>,
    } else {
    }
    %c0 = arith.constant 0 : index
    %c0_1 = arith.constant 0 : index
    %3 = vector.load %arg2[%c0, %c0_1] : memref<16x32xf32, #tpu.memory_space<vmem>>, vector<16x32xf32>
    %c0_2 = arith.constant 0 : index
    %c0_3 = arith.constant 0 : index
    %4 = vector.load %arg3[%c0_2, %c0_3] : memref<16x32xbf16, #tpu.memory_space<vmem>>, vector<16x32xbf16>
    %5 = arith.extf %4 : vector<16x32xbf16> to vector<16x32xf32>
    %c0_4 = arith.constant 0 : index
    %c0_5 = arith.constant 0 : index
    %6 = vector.load %arg4[%c0_4, %c0_5] : memref<16x1xf32, #tpu.memory_space<vmem>>, vector<16x1xf32>
    %c1_i32 = arith.constant 1 : i32
    %7 = arith.muli %arg0, %c1_i32 : i32
    %8 = arith.addi %7, %arg1 : i32
    %c16_i32 = arith.constant 16 : i32
    %9 = arith.muli %8, %c16_i32 : i32
    %10 = tpu.iota {dimensions = array<i32: 0>} : vector<16x1xi32>
    %11 = vector.broadcast %9 : i32 to vector<16x1xi32>
    %12 = arith.addi %11, %10 : vector<16x1xi32>
    %c16_i32_6 = arith.constant 16 : i32
    %13 = vector.broadcast %c16_i32_6 : i32 to vector<16x1xi32>
    %14 = arith.cmpi slt, %12, %13 : vector<16x1xi32>
    %cst = arith.constant 0.000000e+00 : f32
    %15 = vector.shape_cast %14 : vector<16x1xi1> to vector<16x1xi1>
    %16 = vector.broadcast %15 : vector<16x1xi1> to vector<16x32xi1>
    %17 = vector.broadcast %cst : f32 to vector<16x32xf32>
    %18 = arith.select %16, %3, %17 : vector<16x32xi1>, vector<16x32xf32>
    %cst_7 = arith.constant 0.000000e+00 : f32
    %19 = vector.shape_cast %14 : vector<16x1xi1> to vector<16x1xi1>
    %20 = vector.broadcast %19 : vector<16x1xi1> to vector<16x32xi1>
    %21 = vector.broadcast %cst_7 : f32 to vector<16x32xf32>
    %22 = arith.select %20, %5, %21 : vector<16x32xi1>, vector<16x32xf32>
    %cst_8 = arith.constant 0.000000e+00 : f32
    %23 = vector.broadcast %cst_8 : f32 to vector<16x1xf32>
    %24 = arith.select %14, %6, %23 : vector<16x1xi1>, vector<16x1xf32>
    %cst_9 = arith.constant 0.000000e+00 : f32
    %25 = vector.broadcast %cst_9 : f32 to vector<16x32xf32>
    %26 = arith.maximumf %18, %25 : vector<16x32xf32>
    %27 = arith.mulf %18, %22 : vector<16x32xf32>
    %28 = arith.subf %26, %27 : vector<16x32xf32>
    %29 = math.absf %18 : vector<16x32xf32>
    %cst_10 = arith.constant 0.000000e+00 : f32
    %30 = vector.broadcast %cst_10 : f32 to vector<16x32xf32>
    %31 = arith.subf %30, %29 : vector<16x32xf32>
    %32 = math.exp %31 : vector<16x32xf32>
    %33 = math.log1p %32 : vector<16x32xf32>
    %34 = arith.addf %28, %33 : vector<16x32xf32>
    %35 = vector.broadcast %24 : vector<16x1xf32> to vector<16x32xf32>
    %36 = arith.mulf %34, %35 : vector<16x32xf32>
    %c0_11 = arith.constant 0 : index
    %c0_12 = arith.constant 0 : index
    %c0_13 = arith.constant 0 : index
    %37 = vector.load %arg5[%c0_11, %c0_12, %c0_13] : memref<1x1x32xf32, #tpu.memory_space<vmem>>, vector<1x1x32xf32>
    %38 = vector.shape_cast %37 : vector<1x1x32xf32> to vector<1x32xf32>
    %cst_14 = arith.constant dense<0.000000e+00> : vector<32xf32>
    %39 = vector.multi_reduction <add>, %36, %cst_14 [0] : vector<16x32xf32> to vector<32xf32>
    %40 = vector.shape_cast %39 : vector<32xf32> to vector<1x32xf32>
    %41 = arith.addf %38, %40 : vector<1x32xf32>
    %c0_15 = arith.constant 0 : index
    %c0_16 = arith.constant 0 : index
    %c0_17 = arith.constant 0 : index
    %42 = vector.load %arg5[%c0_15, %c0_16, %c0_17] : memref<1x1x32xf32, #tpu.memory_space<vmem>>, vector<1x1x32xf32>
    %43 = vector.shape_cast %42 : vector<1x1x32xf32> to vector<1x32xf32>
    %44 = vector.shape_cast %41 : vector<1x32xf32> to vector<1x1x32xf32>
    tpu.vector_store %arg5[%c0_15, %c0_16, %c0_17], %44 {strides = array<i32>} : memref<1x1x32xf32, #tpu.memory_space<vmem>>, vector<1x1x32xf32>,
    return
  }
  func.func @transform_0(%arg0: i32, %arg1: i32) -> (i32, i32) {
    %c1_i32 = arith.constant 1 : i32
    %0 = arith.muli %arg0, %c1_i32 : i32
    %1 = arith.addi %0, %arg1 : i32
    %c0_i32 = arith.constant 0 : i32
    %2 = arith.minsi %1, %c0_i32 : i32
    %c0_i32_0 = arith.constant 0 : i32
    %c0_i32_1 = arith.constant 0 : i32
    return %2, %c0_i32_0 : i32, i32
  }
  func.func @transform_1(%arg0: i32, %arg1: i32) -> (i32, i32) {
    %c1_i32 = arith.constant 1 : i32
    %0 = arith.muli %arg0, %c1_i32 : i32
    %1 = arith.addi %0, %arg1 : i32
    %c0_i32 = arith.constant 0 : i32
    %2 = arith.minsi %1, %c0_i32 : i32
    %c0_i32_0 = arith.constant 0 : i32
    %c0_i32_1 = arith.constant 0 : i32
    return %2, %c0_i32_0 : i32, i32
  }
  func.func @transform_2(%arg0: i32, %arg1: i32) -> (i32, i32) {
    %c1_i32 = arith.constant 1 : i32
    %0 = arith.muli %arg0, %c1_i32 : i32
    %1 = arith.addi %0, %arg1 : i32
    %c0_i32 = arith.constant 0 : i32
    %2 = arith.minsi %1, %c0_i32 : i32
    %c0_i32_0 = arith.constant 0 : i32
    %c0_i32_1 = arith.constant 0 : i32
    return %2, %c0_i32_0 : i32, i32
  }
  func.func @transform_3(%arg0: i32, %arg1: i32) -> (i32, i32, i32) {
    %c0_i32 = arith.constant 0 : i32
    %c0_i32_0 = arith.constant 0 : i32
    %c0_i32_1 = arith.constant 0 : i32
    return %arg0, %c0_i32, %c0_i32_0 : i32, i32, i32
  }
}

</mosaic_0001>

<bundles_post_ra>
// kernel: tpu_custom_call.1
= control target key start
LH: loop header
LB: loop body
LE: loop exit
PB: predicated region body
PF: predicated region fallthrough
CT: control target
= control target key end

     0   :  { %8 = vsyncpa [#allocation3], 0  ;;  %s357_s0 = inlined_call_operand.vmem [shape: f32[16,32], index: 0, kind: input, shape index: {}]   ;;  %s358_s1 = inlined_call_operand.hbm [shape: bf16[16,32], index: 1, kind: input, shape index: {}]   ;;  %s359_s2 = inlined_call_operand.vmem [shape: f32[16,1], index: 2, kind: input, shape index: {}]   ;;  %s360_s3 = inlined_call_operand.hbm [shape: f32[1,1,32], index: 3, kind: output, shape index: {}]  }
   0x1   :  { %9 = vsyncpa [#allocation4], 0  ;;  %s293_s12 = smov [#allocation2]   ;;  %s245_s16 = scalar_lea.hbm %s358_s1, 128 }
   0x2   :  { %s35_s13 = sshll.u32 %s293_s12, 4  ;;  %p246_p0 = scmp.ne.s32.totalorder %s358_s1, %s245_s16  ;;  %s36_s13 = int_to_ptr.vmem [resolvable:$true] %s35_s13 }
   0x3   :  { %p249_p1 = scmp.lt.u32.totalorder %s245_s16, %s358_s1 }
   0x5   :  { %p251_p2 = pnand %p249_p1, %p246_p0 }
   0x7   :  { %254 = shalt.err (!%p251_p2)
}
   0x8   :  { %s255_s21 = scalar_lea.vmem %s36_s13, 128  ;;  %p260_p4 = scmp.lt.s32.totalorder %s36_s13, %s36_s13 }
   0x9   :  { %p256_p3 = scmp.ne.s32.totalorder %s36_s13, %s255_s21  ;;  %p261_p5 = scmp.lt.s32.totalorder %s255_s21, %s255_s21 }
   0xb   :  { %p262_p6 = por %p261_p5, %p260_p4 }
   0xd   :  { %p263_p7 = pnand %p262_p6, %p256_p3 }
   0xf   :  { %266 = shalt.err (!%p263_p7)
}
  0x10   :  { %s294_s22 = smov 64   ;;  %s295_s23 = smov 4  }
  0x11   :  { %41 = dma.hbm_to_vmem [thread:$0]  %s358_s1, 128, %s36_s13, [#allocation3], %s294_s22, %s294_s22, %s295_s23  }
  0x12   :  { %289 = dma.done.wait [#allocation3], 128  }
  0x13   :  { %290 = vsyncadd [#allocation3], 4294967168  ;;  %v296_v0 = vmov 0   ;;  %v115_v1 = vld [vmem:[%s359_s2] sm:$0xff]  ;;  %v116_v2 = vld [vmem:[%s359_s2 + $0x8] sm:$0xff]  ;;  %vm107_vm0 = vcmask 253952  }
  0x14   :  { %236 = vset.pattern.permute.xlu0 %v296_v0  ;;  %v297_v3 = vmov 0.0   ;;  %v109_v4 = vld [vmem:[%s357_s0] sm:$0xff]  ;;  %v110_v5 = vld [vmem:[%s357_s0 + $0x8] sm:$0xff]  ;;  %vm184_vm3 = vcmask 261120   ;;  %s298_s0 = smov [#allocation5]  }
  0x15   :  { %173 = vperm.xlu0 %236, %v115_v1   ;;  %108 = vst.msk [vmem:[#allocation5] sm:$0x1] %vm107_vm0, %v297_v3  ;;  %v143_v6 = vand.u32 2147483647, %v109_v4  ;;  %v144_v7 = vand.u32 2147483647, %v110_v5 }
  0x16   :  { %v227_v16 = vld [vmem:[#allocation2] sm:$0xff]   ;;  %v137_v26 = vmax.f32 %v109_v4, 0.0  ;;  %v138_v31 = vmax.f32 %v110_v5, 0.0  ;;  %s203_s2 = sshll.u32 %s298_s0, 4  ;;  %s204_s2 = int_to_ptr.vmem [resolvable:$true] %s203_s2 }
  0x17   :  { %v145_v8 = vsub.f32 0.0, %v143_v6  ;;  %v146_v9 = vsub.f32 0.0, %v144_v7  ;;  %v228_v19 = vunpack.c.l.bf16 %v227_v16  ;;  %v229_v23 = vunpack.c.h.bf16 %v227_v16  ;;  %s267_s6 = scalar_lea.vmem %s204_s2, 16  ;;  %s271_s7 = scalar_lea.vmem %s204_s2, 32 }
  0x18   :  { %p268_p8 = scmp.ne.s32.totalorder %s204_s2, %s267_s6  ;;  %p272_p9 = scmp.lt.s32.totalorder %s204_s2, %s204_s2 }
  0x19   :  { %178 = vperm.xlu0 %236, %v116_v2   ;;  %v147_v10 = vmul.f32 1.442695, %v145_v8  ;;  %v149_v11 = vmul.f32 1.442695, %v146_v9  ;;  %v139_v27 = vmul.f32 %v228_v19, %v109_v4  ;;  %v140_v32 = vmul.f32 %v229_v23, %v110_v5  ;;  %p273_p10 = scmp.lt.s32.totalorder %s271_s7, %s267_s6 }
  0x1b   :  { %237 = vpow2.f32 %v147_v10  ;;  %v141_v35 = vsub.f32 %v137_v26, %v139_v27  ;;  %v142_v37 = vsub.f32 %v138_v31, %v140_v32  ;;  %p274_p11 = por %p273_p10, %p272_p9 }
  0x1c   :  { %239 = vpow2.f32 %v149_v11  ;;  %v183_v53 = vld [vmem:[#allocation5] sm:$0x1] }
  0x1d   :  { %p275_p12 = pnand %p274_p11, %p268_p8 }
  0x25   :  { %v238_v12 = vpop.eup %237 }
  0x26   :  { %v240_v13 = vpop.eup %239  ;;  %v151_v14 = vadd.f32 1.0, %v238_v12  ;;  %v154_v17 = vmul.f32 -0.5, %v238_v12  ;;  %v157_v22 = vand.u32 2147483647, %v238_v12 }
  0x27   :  { %v160_v15 = vadd.f32 1.0, %v240_v13  ;;  %v163_v18 = vmul.f32 -0.5, %v240_v13  ;;  %v166_v28 = vand.u32 2147483647, %v240_v13 }
  0x28   :  { %241 = vlog2.f32 %v151_v14  ;;  %v155_v20 = vadd.f32 1.0, %v154_v17  ;;  %vm158_vm1 = vcmp.lt.f32.partialorder %v157_v22, 0.0004427343 }
  0x29   :  { %243 = vlog2.f32 %v160_v15  ;;  %v164_v24 = vadd.f32 1.0, %v163_v18  ;;  %vm167_vm2 = vcmp.lt.f32.partialorder %v166_v28, 0.0004427343 }
  0x2a   :  { %v156_v30 = vmul.f32 %v238_v12, %v155_v20 }
  0x2b   :  { %v165_v34 = vmul.f32 %v240_v13, %v164_v24 }
  0x32   :  { %v242_v21 = vpop.eup %241 }
  0x33   :  { %v244_v25 = vpop.eup %243  ;;  %v153_v29 = vmul.f32 0.6931472, %v242_v21 }
  0x34   :  { %v162_v33 = vmul.f32 0.6931472, %v244_v25 }
  0x35   :  { %v159_v36 = vsel %vm158_vm1, %v156_v30, %v153_v29 }
  0x36   :  { %v168_v38 = vsel %vm167_vm2, %v165_v34, %v162_v33  ;;  %v169_v39 = vadd.f32 %v159_v36, %v141_v35 }
  0x37   :  { %v170_v41 = vadd.f32 %v168_v38, %v142_v37 }
  0x94   :  { %v174_v40 = vpop.permute.xlu0 %173 }
  0x95   :  { %v181_v42 = vmul.f32 %v174_v40, %v169_v39 }
  0x97   :  { %v185_v45 = vsel %vm184_vm3, %v181_v42, 0.0 }
  0x98   :  { %v179_v43 = vpop.permute.xlu0 %178 }
  0x99   :  { %v182_v44 = vmul.f32 %v179_v43, %v170_v41 }
  0x9b   :  { %v186_v46 = vsel %vm184_vm3, %v182_v44, 0.0 }
  0x9c   :  { %v187_v47 = vadd.f32 %v186_v46, %v185_v45 }
  0x9e   :  { %v188_v48 = vrot.slane %v187_v47, 4 }
  0xa0   :  { %v189_v49 = vadd.f32 %v188_v48, %v187_v47 }
  0xa2   :  { %v190_v50 = vrot.slane %v189_v49, 2 }
  0xa4   :  { %v191_v51 = vadd.f32 %v190_v50, %v189_v49 }
  0xa6   :  { %v192_v52 = vrot.slane %v191_v51, 1 }
  0xa8   :  { %v193_v54 = vadd.f32 %v192_v52, %v191_v51 }
  0xaa   :  { %v194_v55 = vadd.f32 %v193_v54, %v183_v53 }
  0xac   :  { %196 = vst.msk [vmem:[#allocation5] sm:$0x1] %vm107_vm0, %v194_v55 }
  0xad   :  { %278 = shalt.err (!%p275_p12)
}
  0xae   :  { %s279_s10 = scalar_lea.hbm %s360_s3, 16 }
  0xaf   :  { %p280_p13 = scmp.ne.s32.totalorder %s360_s3, %s279_s10  ;;  %p283_p0 = scmp.lt.u32.totalorder %s279_s10, %s360_s3 }
  0xb1   :  { %p285_p1 = pnand %p283_p0, %p280_p13 }
  0xb3   :  { %288 = shalt.err (!%p285_p1)
}
  0xb4   :  { %206 = dma.vmem_to_hbm [thread:$0]  %s204_s2, 16, %s360_s3, [#allocation4]  }
  0xb5   :  { %291 = dma.done.wait [#allocation4], 16  }
  0xb6   :  { %292 = vsyncadd [#allocation4], 4294967280 }
  0xb7   :  { %210 = vsyncpa [#allocation3], 1 }
  0xb8   :  { %211 = vsyncpa [#allocation4], 1 }

</bundles_post_ra>
